<compile_context>
chip_gen: v7x
topology: tpu7x:2x2x1
jax: 0.10.0
libtpu: 0.0.40
codegen_flags: <defaults>
</compile_context>

<pallas_src>
import functools

import jax
import jax.numpy as jnp
from jax.experimental import pallas as pl
from jax.experimental.pallas import tpu as pltpu

# Layer sizes of DenseClassifier: 265 -> 200 -> 100 -> ... -> 100 (8 LinLayers)
LAYER_DIMS = [(265, 200), (200, 100)] + [(100, 100)] * 6
NUM_LAYERS = len(LAYER_DIMS)
BN_EPS = 1e-3

IN_DIM = 265
IN_PAD = 384                       # 265 -> 384 (multiple of 128)
HID_PADS = [256] + [128] * 7       # padded output widths per layer
OUT_DIM = 100
OUT_PAD = 128


def _round_up(n, m):
    return ((n + m - 1) // m) * m


def dense_classifier_kernel(x_ref, w0_ref, w1_ref, w2_ref, b_ref,
                            scale_ref, shift_ref, o_ref):
    """Fused 8-layer MLP on one (TB, 384) bf16 batch tile.

    w0: (384, 256) bf16      layer 1
    w1: (256, 128) bf16      layer 2 (BN-1 folded in)
    w2: (6, 128, 128) bf16   layers 3..8 (BN folded in)
    b : (8, 256)  f32        folded biases (row i = layer i+1, lane-padded)
    scale/shift: (1, 128) f32  last layer's BN affine (epilogue)
    """
    h = x_ref[...]                                               # (TB, 384) bf16

    # layer 1: (TB,384) @ (384,256); bias + ReLU in f32, store bf16
    y = jnp.dot(h, w0_ref[...], preferred_element_type=jnp.float32)
    h = jnp.maximum(y + b_ref[0:1, :256], 0.0).astype(jnp.bfloat16)

    # layer 2: (TB,256) @ (256,128)
    y = jnp.dot(h, w1_ref[...], preferred_element_type=jnp.float32)
    h = jnp.maximum(y + b_ref[1:2, :128], 0.0).astype(jnp.bfloat16)

    # layers 3..7: (TB,128) @ (128,128), unrolled at trace time
    for i in range(5):
        y = jnp.dot(h, w2_ref[i], preferred_element_type=jnp.float32)
        h = jnp.maximum(y + b_ref[2 + i:3 + i, :128], 0.0).astype(jnp.bfloat16)

    # layer 8: keep f32 into the epilogue
    y = jnp.dot(h, w2_ref[5], preferred_element_type=jnp.float32)
    h = jnp.maximum(y + b_ref[7:8, :128], 0.0)                   # (TB, 128) f32

    # epilogue: last layer's BN affine (dropout = identity at inference)
    o_ref[...] = h * scale_ref[...] + shift_ref[...]


def init_params(key):
    """PyTorch-like init: Linear U(-1/sqrt(in)) for W and b; fresh BatchNorm1d
    (gamma=1, beta=0, running_mean=0, running_var=1)."""
    ws, bs, gammas, betas, means, vars_ = [], [], [], [], [], []
    for in_chn, out_chn in LAYER_DIMS:
        key, kw, kb = jax.random.split(key, 3)
        bound = 1.0 / float(in_chn) ** 0.5
        # Stored transposed as [in, out] so the kernel computes x @ W directly.
        ws.append(jax.random.uniform(kw, (in_chn, out_chn), jnp.float32, -bound, bound))
        bs.append(jax.random.uniform(kb, (out_chn,), jnp.float32, -bound, bound))
        gammas.append(jnp.ones((out_chn,), jnp.float32))
        betas.append(jnp.zeros((out_chn,), jnp.float32))
        means.append(jnp.zeros((out_chn,), jnp.float32))
        vars_.append(jnp.ones((out_chn,), jnp.float32))
    return ws, bs, gammas, betas, means, vars_


def pack_params(ws, bs, gammas, betas, means, vars_):
    """Fold BN(eval) of layer i into layer i+1, pad lane-dense, pack into 6 arrays."""
    scales = [g / jnp.sqrt(v + BN_EPS) for g, v in zip(gammas, vars_)]
    shifts = [bt - m * s for bt, m, s in zip(betas, means, scales)]

    # h_i = scale_i*relu(h_{i-1} W_i + b_i) + shift_i  ==>
    # relu-layer i+1 sees W'_{i+1} = diag(scale_i) @ W_{i+1},
    #                    b'_{i+1} = shift_i @ W_{i+1} + b_{i+1}.
    folded_w, folded_b = [], []
    for i, (w, b) in enumerate(zip(ws, bs)):
        if i == 0:
            folded_w.append(w)
            folded_b.append(b)
        else:
            folded_w.append(scales[i - 1][:, None] * w)
            folded_b.append(shifts[i - 1] @ w + b)

    in_pads = [IN_PAD] + HID_PADS[:-1]
    packed_w = []
    for w, ip, op in zip(folded_w, in_pads, HID_PADS):
        pw = jnp.zeros((ip, op), jnp.float32).at[:w.shape[0], :w.shape[1]].set(w)
        packed_w.append(pw.astype(jnp.bfloat16))
    w0 = packed_w[0]                        # (384, 256)
    w1 = packed_w[1]                        # (256, 128)
    w2 = jnp.stack(packed_w[2:], axis=0)    # (6, 128, 128)

    b_pack = jnp.zeros((NUM_LAYERS, HID_PADS[0]), jnp.float32)
    for i, b in enumerate(folded_b):
        b_pack = b_pack.at[i, :b.shape[0]].set(b)

    scale_pack = jnp.ones((1, OUT_PAD), jnp.float32).at[0, :OUT_DIM].set(scales[-1])
    shift_pack = jnp.zeros((1, OUT_PAD), jnp.float32).at[0, :OUT_DIM].set(shifts[-1])
    return w0, w1, w2, b_pack, scale_pack, shift_pack


def _choose_tb(batch, block_batch):
    """Batch tile: multiple of 16 (bf16 sublane packing), capped at block_batch,
    sized so mid/large batches give >= 2 grid steps (v7x megacore)."""
    b16 = _round_up(batch, 16)
    if b16 <= 16:
        return 16
    half = _round_up(pl.cdiv(b16, 2), 16)
    return max(16, _round_up(min(block_batch, half), 16))


@functools.partial(jax.jit, static_argnames=("block_batch",))
def dense_classifier(x, params, *, block_batch=1024):
    w0, w1, w2, b, scale, shift = params
    B, F = x.shape
    TB = _choose_tb(B, block_batch)
    B_pad = _round_up(B, TB)
    # Single fused pad+cast: x travels HBM->kernel as bf16 (half the bytes).
    x_pad = jnp.zeros((B_pad, IN_PAD), jnp.bfloat16).at[:B, :F].set(
        x.astype(jnp.bfloat16))

    out = pl.pallas_call(
        dense_classifier_kernel,
        out_shape=jax.ShapeDtypeStruct((B_pad, OUT_PAD), jnp.float32),
        grid=(B_pad // TB,),
        in_specs=[
            pl.BlockSpec((TB, IN_PAD), lambda i: (i, 0)),     # x: pipelined per tile
            pl.BlockSpec(w0.shape, lambda i: (0, 0)),         # params: VMEM-resident
            pl.BlockSpec(w1.shape, lambda i: (0, 0)),
            pl.BlockSpec(w2.shape, lambda i: (0, 0, 0)),
            pl.BlockSpec(b.shape, lambda i: (0, 0)),
            pl.BlockSpec(scale.shape, lambda i: (0, 0)),
            pl.BlockSpec(shift.shape, lambda i: (0, 0)),
        ],
        out_specs=pl.BlockSpec((TB, OUT_PAD), lambda i: (i, 0)),
        compiler_params=pltpu.CompilerParams(
            dimension_semantics=("parallel",)),
    )(x_pad, w0, w1, w2, b, scale, shift)
    return out[:B, :OUT_DIM]


def reference_packed(x, params):
    """Mirrors the kernel's math (folded params, bf16 activations/weights,
    f32 accumulation, f32 epilogue)."""
    w0, w1, w2, b, scale, shift = params
    B, F = x.shape
    h = jnp.zeros((B, IN_PAD), jnp.bfloat16).at[:, :F].set(x.astype(jnp.bfloat16))
    h = jnp.maximum(jnp.dot(h, w0, preferred_element_type=jnp.float32)
                    + b[0:1, :256], 0.0).astype(jnp.bfloat16)
    h = jnp.maximum(jnp.dot(h, w1, preferred_element_type=jnp.float32)
                    + b[1:2, :128], 0.0).astype(jnp.bfloat16)
    for i in range(5):
        h = jnp.maximum(jnp.dot(h, w2[i], preferred_element_type=jnp.float32)
                        + b[2 + i:3 + i, :128], 0.0).astype(jnp.bfloat16)
    h = jnp.maximum(jnp.dot(h, w2[5], preferred_element_type=jnp.float32)
                    + b[7:8, :128], 0.0)
    return (h * scale + shift)[:, :OUT_DIM]


def reference_f32(x, ws, bs, gammas, betas, means, vars_):
    """Original unfused f32 semantics: dropout(bn(relu(lin(x)))) per layer."""
    h = x.astype(jnp.float32)
    for w, b, g, bt, m, v in zip(ws, bs, gammas, betas, means, vars_):
        a = jnp.maximum(h @ w + b, 0.0)
        h = (a - m) / jnp.sqrt(v + BN_EPS) * g + bt
    return h


if __name__ == "__main__":
    key = jax.random.PRNGKey(0)
    key, kx = jax.random.split(key)
    raw = init_params(key)
    params = pack_params(*raw)

    # Small serving-style batch.
    B = 8
    x = jax.random.normal(kx, (B, IN_DIM), jnp.float32)
    out = jax.block_until_ready(dense_classifier(x, params))
    assert out.shape == (B, OUT_DIM), out.shape

    ref_p = reference_packed(x, params)
    assert jnp.allclose(out, ref_p, atol=2e-3, rtol=2e-3), \
        float(jnp.max(jnp.abs(out - ref_p)))

    ref_full = reference_f32(x, *raw)   # full-f32 original semantics (bf16 tolerance)
    assert jnp.allclose(out, ref_full, atol=5e-2, rtol=5e-2), \
        float(jnp.max(jnp.abs(out - ref_full)))

    # Larger batch exercising a multi-step, pipelined "parallel" grid (>=2 steps).
    key, kx2 = jax.random.split(key)
    B2 = 300
    x2 = jax.random.normal(kx2, (B2, IN_DIM), jnp.float32)
    out2 = jax.block_until_ready(dense_classifier(x2, params))
    assert out2.shape == (B2, OUT_DIM), out2.shape
    ref2 = reference_packed(x2, params)
    assert jnp.allclose(out2, ref2, atol=2e-3, rtol=2e-3), \
        float(jnp.max(jnp.abs(out2 - ref2)))

    print("KERNEL_OK")
</pallas_src>

<mosaic_0001>
module attributes {stable_mosaic.version = 11 : i64} {
  func.func @dense_classifier_kernel(%arg0: i32, %arg1: memref<16x384xbf16, #tpu.memory_space<vmem>>, %arg2: memref<384x256xbf16, #tpu.memory_space<vmem>>, %arg3: memref<256x128xbf16, #tpu.memory_space<vmem>>, %arg4: memref<6x128x128xbf16, #tpu.memory_space<vmem>>, %arg5: memref<8x256xf32, #tpu.memory_space<vmem>>, %arg6: memref<1x128xf32, #tpu.memory_space<vmem>>, %arg7: memref<1x128xf32, #tpu.memory_space<vmem>>, %arg8: memref<16x128xf32, #tpu.memory_space<vmem>>) attributes {dimension_semantics = [#tpu.dimension_semantics<parallel>], iteration_bounds = array<i64: 1>, scalar_prefetch = 0 : i64, scratch_operands = 0 : i64, tpu.core_type = #tpu.core_type<tc>, window_params = [{transform_indices = @transform_0, window_bounds = array<i64: 16, 384>}, {pipeline_mode = #tpu.pipeline_mode<synchronous>, transform_indices = @transform_1, window_bounds = array<i64: 384, 256>}, {pipeline_mode = #tpu.pipeline_mode<synchronous>, transform_indices = @transform_2, window_bounds = array<i64: 256, 128>}, {pipeline_mode = #tpu.pipeline_mode<synchronous>, transform_indices = @transform_3, window_bounds = array<i64: 6, 128, 128>}, {pipeline_mode = #tpu.pipeline_mode<synchronous>, transform_indices = @transform_4, window_bounds = array<i64: 8, 256>}, {pipeline_mode = #tpu.pipeline_mode<synchronous>, transform_indices = @transform_5, window_bounds = array<i64: 1, 128>}, {pipeline_mode = #tpu.pipeline_mode<synchronous>, transform_indices = @transform_6, window_bounds = array<i64: 1, 128>}, {transform_indices = @transform_7, window_bounds = array<i64: 16, 128>}]} {
    %c0 = arith.constant 0 : index
    %c0_0 = arith.constant 0 : index
    %0 = vector.load %arg1[%c0, %c0_0] : memref<16x384xbf16, #tpu.memory_space<vmem>>, vector<16x384xbf16>
    %c0_1 = arith.constant 0 : index
    %c0_2 = arith.constant 0 : index
    %1 = vector.load %arg2[%c0_1, %c0_2] : memref<384x256xbf16, #tpu.memory_space<vmem>>, vector<384x256xbf16>
    %cst = arith.constant dense<0.000000e+00> : vector<16x256xf32>
    %2 = tpu.matmul %0, %1, %cst {dimension_numbers = #tpu.dot_dimension_numbers<[1], [0], [0], [1], [0, 0, 1, 1], [], []>} : vector<16x384xbf16>, vector<384x256xbf16>, vector<16x256xf32> -> vector<16x256xf32>
    %c0_3 = arith.constant 0 : index
    %c0_4 = arith.constant 0 : index
    %3 = vector.load %arg5[%c0_3, %c0_4] : memref<8x256xf32, #tpu.memory_space<vmem>>, vector<1x256xf32>
    %4 = vector.broadcast %3 : vector<1x256xf32> to vector<16x256xf32>
    %5 = arith.addf %2, %4 : vector<16x256xf32>
    %cst_5 = arith.constant 0.000000e+00 : f32
    %6 = vector.broadcast %cst_5 : f32 to vector<16x256xf32>
    %7 = arith.maximumf %5, %6 : vector<16x256xf32>
    %8 = arith.truncf %7 : vector<16x256xf32> to vector<16x256xbf16>
    %c0_6 = arith.constant 0 : index
    %c0_7 = arith.constant 0 : index
    %9 = vector.load %arg3[%c0_6, %c0_7] : memref<256x128xbf16, #tpu.memory_space<vmem>>, vector<256x128xbf16>
    %cst_8 = arith.constant dense<0.000000e+00> : vector<16x128xf32>
    %10 = tpu.matmul %8, %9, %cst_8 {dimension_numbers = #tpu.dot_dimension_numbers<[1], [0], [0], [1], [0, 0, 1, 1], [], []>} : vector<16x256xbf16>, vector<256x128xbf16>, vector<16x128xf32> -> vector<16x128xf32>
    %c1 = arith.constant 1 : index
    %c0_9 = arith.constant 0 : index
    %11 = vector.load %arg5[%c1, %c0_9] : memref<8x256xf32, #tpu.memory_space<vmem>>, vector<1x128xf32>
    %12 = vector.broadcast %11 : vector<1x128xf32> to vector<16x128xf32>
    %13 = arith.addf %10, %12 : vector<16x128xf32>
    %cst_10 = arith.constant 0.000000e+00 : f32
    %14 = vector.broadcast %cst_10 : f32 to vector<16x128xf32>
    %15 = arith.maximumf %13, %14 : vector<16x128xf32>
    %16 = arith.truncf %15 : vector<16x128xf32> to vector<16x128xbf16>
    %c0_11 = arith.constant 0 : index
    %c0_12 = arith.constant 0 : index
    %c0_13 = arith.constant 0 : index
    %17 = vector.load %arg4[%c0_11, %c0_12, %c0_13] : memref<6x128x128xbf16, #tpu.memory_space<vmem>>, vector<1x128x128xbf16>
    %18 = vector.shape_cast %17 : vector<1x128x128xbf16> to vector<128x128xbf16>
    %cst_14 = arith.constant dense<0.000000e+00> : vector<16x128xf32>
    %19 = tpu.matmul %16, %18, %cst_14 {dimension_numbers = #tpu.dot_dimension_numbers<[1], [0], [0], [1], [0, 0, 1, 1], [], []>} : vector<16x128xbf16>, vector<128x128xbf16>, vector<16x128xf32> -> vector<16x128xf32>
    %c2 = arith.constant 2 : index
    %c0_15 = arith.constant 0 : index
    %20 = vector.load %arg5[%c2, %c0_15] : memref<8x256xf32, #tpu.memory_space<vmem>>, vector<1x128xf32>
    %21 = vector.broadcast %20 : vector<1x128xf32> to vector<16x128xf32>
    %22 = arith.addf %19, %21 : vector<16x128xf32>
    %cst_16 = arith.constant 0.000000e+00 : f32
    %23 = vector.broadcast %cst_16 : f32 to vector<16x128xf32>
    %24 = arith.maximumf %22, %23 : vector<16x128xf32>
    %25 = arith.truncf %24 : vector<16x128xf32> to vector<16x128xbf16>
    %c1_17 = arith.constant 1 : index
    %c0_18 = arith.constant 0 : index
    %c0_19 = arith.constant 0 : index
    %26 = vector.load %arg4[%c1_17, %c0_18, %c0_19] : memref<6x128x128xbf16, #tpu.memory_space<vmem>>, vector<1x128x128xbf16>
    %27 = vector.shape_cast %26 : vector<1x128x128xbf16> to vector<128x128xbf16>
    %cst_20 = arith.constant dense<0.000000e+00> : vector<16x128xf32>
    %28 = tpu.matmul %25, %27, %cst_20 {dimension_numbers = #tpu.dot_dimension_numbers<[1], [0], [0], [1], [0, 0, 1, 1], [], []>} : vector<16x128xbf16>, vector<128x128xbf16>, vector<16x128xf32> -> vector<16x128xf32>
    %c3 = arith.constant 3 : index
    %c0_21 = arith.constant 0 : index
    %29 = vector.load %arg5[%c3, %c0_21] : memref<8x256xf32, #tpu.memory_space<vmem>>, vector<1x128xf32>
    %30 = vector.broadcast %29 : vector<1x128xf32> to vector<16x128xf32>
    %31 = arith.addf %28, %30 : vector<16x128xf32>
    %cst_22 = arith.constant 0.000000e+00 : f32
    %32 = vector.broadcast %cst_22 : f32 to vector<16x128xf32>
    %33 = arith.maximumf %31, %32 : vector<16x128xf32>
    %34 = arith.truncf %33 : vector<16x128xf32> to vector<16x128xbf16>
    %c2_23 = arith.constant 2 : index
    %c0_24 = arith.constant 0 : index
    %c0_25 = arith.constant 0 : index
    %35 = vector.load %arg4[%c2_23, %c0_24, %c0_25] : memref<6x128x128xbf16, #tpu.memory_space<vmem>>, vector<1x128x128xbf16>
    %36 = vector.shape_cast %35 : vector<1x128x128xbf16> to vector<128x128xbf16>
    %cst_26 = arith.constant dense<0.000000e+00> : vector<16x128xf32>
    %37 = tpu.matmul %34, %36, %cst_26 {dimension_numbers = #tpu.dot_dimension_numbers<[1], [0], [0], [1], [0, 0, 1, 1], [], []>} : vector<16x128xbf16>, vector<128x128xbf16>, vector<16x128xf32> -> vector<16x128xf32>
    %c4 = arith.constant 4 : index
    %c0_27 = arith.constant 0 : index
    %38 = vector.load %arg5[%c4, %c0_27] : memref<8x256xf32, #tpu.memory_space<vmem>>, vector<1x128xf32>
    %39 = vector.broadcast %38 : vector<1x128xf32> to vector<16x128xf32>
    %40 = arith.addf %37, %39 : vector<16x128xf32>
    %cst_28 = arith.constant 0.000000e+00 : f32
    %41 = vector.broadcast %cst_28 : f32 to vector<16x128xf32>
    %42 = arith.maximumf %40, %41 : vector<16x128xf32>
    %43 = arith.truncf %42 : vector<16x128xf32> to vector<16x128xbf16>
    %c3_29 = arith.constant 3 : index
    %c0_30 = arith.constant 0 : index
    %c0_31 = arith.constant 0 : index
    %44 = vector.load %arg4[%c3_29, %c0_30, %c0_31] : memref<6x128x128xbf16, #tpu.memory_space<vmem>>, vector<1x128x128xbf16>
    %45 = vector.shape_cast %44 : vector<1x128x128xbf16> to vector<128x128xbf16>
    %cst_32 = arith.constant dense<0.000000e+00> : vector<16x128xf32>
    %46 = tpu.matmul %43, %45, %cst_32 {dimension_numbers = #tpu.dot_dimension_numbers<[1], [0], [0], [1], [0, 0, 1, 1], [], []>} : vector<16x128xbf16>, vector<128x128xbf16>, vector<16x128xf32> -> vector<16x128xf32>
    %c5 = arith.constant 5 : index
    %c0_33 = arith.constant 0 : index
    %47 = vector.load %arg5[%c5, %c0_33] : memref<8x256xf32, #tpu.memory_space<vmem>>, vector<1x128xf32>
    %48 = vector.broadcast %47 : vector<1x128xf32> to vector<16x128xf32>
    %49 = arith.addf %46, %48 : vector<16x128xf32>
    %cst_34 = arith.constant 0.000000e+00 : f32
    %50 = vector.broadcast %cst_34 : f32 to vector<16x128xf32>
    %51 = arith.maximumf %49, %50 : vector<16x128xf32>
    %52 = arith.truncf %51 : vector<16x128xf32> to vector<16x128xbf16>
    %c4_35 = arith.constant 4 : index
    %c0_36 = arith.constant 0 : index
    %c0_37 = arith.constant 0 : index
    %53 = vector.load %arg4[%c4_35, %c0_36, %c0_37] : memref<6x128x128xbf16, #tpu.memory_space<vmem>>, vector<1x128x128xbf16>
    %54 = vector.shape_cast %53 : vector<1x128x128xbf16> to vector<128x128xbf16>
    %cst_38 = arith.constant dense<0.000000e+00> : vector<16x128xf32>
    %55 = tpu.matmul %52, %54, %cst_38 {dimension_numbers = #tpu.dot_dimension_numbers<[1], [0], [0], [1], [0, 0, 1, 1], [], []>} : vector<16x128xbf16>, vector<128x128xbf16>, vector<16x128xf32> -> vector<16x128xf32>
    %c6 = arith.constant 6 : index
    %c0_39 = arith.constant 0 : index
    %56 = vector.load %arg5[%c6, %c0_39] : memref<8x256xf32, #tpu.memory_space<vmem>>, vector<1x128xf32>
    %57 = vector.broadcast %56 : vector<1x128xf32> to vector<16x128xf32>
    %58 = arith.addf %55, %57 : vector<16x128xf32>
    %cst_40 = arith.constant 0.000000e+00 : f32
    %59 = vector.broadcast %cst_40 : f32 to vector<16x128xf32>
    %60 = arith.maximumf %58, %59 : vector<16x128xf32>
    %61 = arith.truncf %60 : vector<16x128xf32> to vector<16x128xbf16>
    %c5_41 = arith.constant 5 : index
    %c0_42 = arith.constant 0 : index
    %c0_43 = arith.constant 0 : index
    %62 = vector.load %arg4[%c5_41, %c0_42, %c0_43] : memref<6x128x128xbf16, #tpu.memory_space<vmem>>, vector<1x128x128xbf16>
    %63 = vector.shape_cast %62 : vector<1x128x128xbf16> to vector<128x128xbf16>
    %cst_44 = arith.constant dense<0.000000e+00> : vector<16x128xf32>
    %64 = tpu.matmul %61, %63, %cst_44 {dimension_numbers = #tpu.dot_dimension_numbers<[1], [0], [0], [1], [0, 0, 1, 1], [], []>} : vector<16x128xbf16>, vector<128x128xbf16>, vector<16x128xf32> -> vector<16x128xf32>
    %c7 = arith.constant 7 : index
    %c0_45 = arith.constant 0 : index
    %65 = vector.load %arg5[%c7, %c0_45] : memref<8x256xf32, #tpu.memory_space<vmem>>, vector<1x128xf32>
    %66 = vector.broadcast %65 : vector<1x128xf32> to vector<16x128xf32>
    %67 = arith.addf %64, %66 : vector<16x128xf32>
    %cst_46 = arith.constant 0.000000e+00 : f32
    %68 = vector.broadcast %cst_46 : f32 to vector<16x128xf32>
    %69 = arith.maximumf %67, %68 : vector<16x128xf32>
    %c0_47 = arith.constant 0 : index
    %c0_48 = arith.constant 0 : index
    %70 = vector.load %arg6[%c0_47, %c0_48] : memref<1x128xf32, #tpu.memory_space<vmem>>, vector<1x128xf32>
    %71 = vector.broadcast %70 : vector<1x128xf32> to vector<16x128xf32>
    %72 = arith.mulf %69, %71 : vector<16x128xf32>
    %c0_49 = arith.constant 0 : index
    %c0_50 = arith.constant 0 : index
    %73 = vector.load %arg7[%c0_49, %c0_50] : memref<1x128xf32, #tpu.memory_space<vmem>>, vector<1x128xf32>
    %74 = vector.broadcast %73 : vector<1x128xf32> to vector<16x128xf32>
    %75 = arith.addf %72, %74 : vector<16x128xf32>
    %c0_51 = arith.constant 0 : index
    %c0_52 = arith.constant 0 : index
    %76 = vector.load %arg8[%c0_51, %c0_52] : memref<16x128xf32, #tpu.memory_space<vmem>>, vector<16x128xf32>
    tpu.vector_store %arg8[%c0_51, %c0_52], %75 {strides = array<i32>} : memref<16x128xf32, #tpu.memory_space<vmem>>, vector<16x128xf32>,
    return
  }
  func.func @transform_0(%arg0: i32) -> (i32, i32) {
    %c0_i32 = arith.constant 0 : i32
    %c0_i32_0 = arith.constant 0 : i32
    return %arg0, %c0_i32 : i32, i32
  }
  func.func @transform_1(%arg0: i32) -> (i32, i32) {
    %c0_i32 = arith.constant 0 : i32
    %c0_i32_0 = arith.constant 0 : i32
    %c0_i32_1 = arith.constant 0 : i32
    return %c0_i32, %c0_i32_0 : i32, i32
  }
  func.func @transform_2(%arg0: i32) -> (i32, i32) {
    %c0_i32 = arith.constant 0 : i32
    %c0_i32_0 = arith.constant 0 : i32
    %c0_i32_1 = arith.constant 0 : i32
    return %c0_i32, %c0_i32_0 : i32, i32
  }
  func.func @transform_3(%arg0: i32) -> (i32, i32, i32) {
    %c0_i32 = arith.constant 0 : i32
    %c0_i32_0 = arith.constant 0 : i32
    %c0_i32_1 = arith.constant 0 : i32
    %c0_i32_2 = arith.constant 0 : i32
    return %c0_i32, %c0_i32_0, %c0_i32_1 : i32, i32, i32
  }
  func.func @transform_4(%arg0: i32) -> (i32, i32) {
    %c0_i32 = arith.constant 0 : i32
    %c0_i32_0 = arith.constant 0 : i32
    %c0_i32_1 = arith.constant 0 : i32
    return %c0_i32, %c0_i32_0 : i32, i32
  }
  func.func @transform_5(%arg0: i32) -> (i32, i32) {
    %c0_i32 = arith.constant 0 : i32
    %c0_i32_0 = arith.constant 0 : i32
    %c0_i32_1 = arith.constant 0 : i32
    return %c0_i32, %c0_i32_0 : i32, i32
  }
  func.func @transform_6(%arg0: i32) -> (i32, i32) {
    %c0_i32 = arith.constant 0 : i32
    %c0_i32_0 = arith.constant 0 : i32
    %c0_i32_1 = arith.constant 0 : i32
    return %c0_i32, %c0_i32_0 : i32, i32
  }
  func.func @transform_7(%arg0: i32) -> (i32, i32) {
    %c0_i32 = arith.constant 0 : i32
    %c0_i32_0 = arith.constant 0 : i32
    return %arg0, %c0_i32 : i32, i32
  }
}

</mosaic_0001>

<bundles_post_ra>
// kernel: dense_classifier.1
= control target key start
LH: loop header
LB: loop body
LE: loop exit
PB: predicated region body
PF: predicated region fallthrough
CT: control target
= control target key end

     0   :  { %12 = vsyncpa [#allocation3], 0  ;;  %s2075_s0 = inlined_call_operand.vmem [shape: bf16[16,384], index: 0, kind: input, shape index: {}]   ;;  %s2076_s1 = inlined_call_operand.hbm [shape: bf16[384,256], index: 1, kind: input, shape index: {}]   ;;  %s2077_s2 = inlined_call_operand.hbm [shape: bf16[256,128], index: 2, kind: input, shape index: {}]   ;;  %s2078_s3 = inlined_call_operand.hbm [shape: bf16[6,128,128], index: 3, kind: input, shape index: {}]   ;;  %s2079_s4 = inlined_call_operand.vmem [shape: f32[8,256], index: 4, kind: input, shape index: {}]   ;;  %s2080_s5 = inlined_call_operand.vmem [shape: f32[1,128], index: 5, kind: input, shape index: {}]   ;;  %s2081_s6 = inlined_call_operand.vmem [shape: f32[1,128], index: 6, kind: input, shape index: {}]   ;;  %s2082_s7 = inlined_call_operand.vmem [shape: f32[16,128], index: 7, kind: output, shape index: {}]  }
   0x1   :  { %13 = vsyncpa [#allocation5], 0  ;;  %s1878_s24 = smov [#allocation4]   ;;  %s1808_s28 = scalar_lea.hbm %s2077_s2, 2048 }
   0x2   :  { %s33_s25 = sshll.u32 %s1878_s24, 4  ;;  %p1809_p0 = scmp.ne.s32.totalorder %s2077_s2, %s1808_s28  ;;  %s34_s25 = int_to_ptr.vmem [resolvable:$true] %s33_s25 }
   0x3   :  { %p1812_p1 = scmp.lt.u32.totalorder %s1808_s28, %s2077_s2 }
   0x5   :  { %p1814_p2 = pnand %p1812_p1, %p1809_p0 }
   0x7   :  { %1817 = shalt.err (!%p1814_p2)
}
   0x8   :  { %s1818_s10 = scalar_lea.vmem %s34_s25, 2048  ;;  %p1823_p4 = scmp.lt.s32.totalorder %s34_s25, %s34_s25 }
   0x9   :  { %p1819_p3 = scmp.ne.s32.totalorder %s34_s25, %s1818_s10  ;;  %p1824_p5 = scmp.lt.s32.totalorder %s1818_s10, %s1818_s10 }
   0xb   :  { %p1825_p6 = por %p1824_p5, %p1823_p4 }
   0xd   :  { %p1826_p7 = pnand %p1825_p6, %p1819_p3 }
   0xf   :  { %1829 = shalt.err (!%p1826_p7)
}
  0x10   :  { %s1879_s11 = smov 64   ;;  %s1880_s12 = smov 4  }
  0x11   :  { %39 = dma.hbm_to_vmem [thread:$0]  %s2077_s2, 2048, %s34_s25, [#allocation5], %s1879_s11, %s1879_s11, %s1880_s12  }
  0x12   :  { %s1881_s15 = smov [#allocation2]   ;;  %s1830_s19 = scalar_lea.hbm %s2076_s1, 6144 }
  0x13   :  { %s21_s16 = sshll.u32 %s1881_s15, 4  ;;  %p1831_p8 = scmp.ne.s32.totalorder %s2076_s1, %s1830_s19  ;;  %s22_s16 = int_to_ptr.vmem [resolvable:$true] %s21_s16 }
  0x14   :  { %p1834_p9 = scmp.lt.u32.totalorder %s1830_s19, %s2076_s1 }
  0x16   :  { %p1836_p10 = pnand %p1834_p9, %p1831_p8 }
  0x18   :  { %1839 = shalt.err (!%p1836_p10)
}
  0x19   :  { %s1840_s24 = scalar_lea.vmem %s22_s16, 6144  ;;  %p1845_p12 = scmp.lt.s32.totalorder %s22_s16, %s22_s16 }
  0x1a   :  { %p1841_p11 = scmp.ne.s32.totalorder %s22_s16, %s1840_s24  ;;  %p1846_p13 = scmp.lt.s32.totalorder %s1840_s24, %s1840_s24 }
  0x1c   :  { %p1847_p0 = por %p1846_p13, %p1845_p12 }
  0x1e   :  { %p1848_p1 = pnand %p1847_p0, %p1841_p11 }
  0x20   :  { %1851 = shalt.err (!%p1848_p1)
}
  0x21   :  { %s1882_s2 = smov 128   ;;  %s1883_s25 = smov 8  }
  0x22   :  { %27 = dma.hbm_to_vmem [thread:$0]  %s2076_s1, 6144, %s22_s16, [#allocation3], %s1882_s2, %s1882_s2, %s1883_s25  }
  0x23   :  { %s1884_s28 = smov [#allocation6]   ;;  %s1852_s9 = scalar_lea.hbm %s2078_s3, 6144 }
  0x24   :  { %s45_s29 = sshll.u32 %s1884_s28, 4  ;;  %p1853_p2 = scmp.ne.s32.totalorder %s2078_s3, %s1852_s9  ;;  %s46_s29 = int_to_ptr.vmem [resolvable:$true] %s45_s29 }
  0x25   :  { %p1856_p3 = scmp.lt.u32.totalorder %s1852_s9, %s2078_s3 }
  0x27   :  { %p1858_p4 = pnand %p1856_p3, %p1853_p2 }
  0x29   :  { %1861 = shalt.err (!%p1858_p4)
}
  0x2a   :  { %s1862_s17 = scalar_lea.vmem %s46_s29, 6144  ;;  %p1867_p6 = scmp.lt.s32.totalorder %s46_s29, %s46_s29 }
  0x2b   :  { %p1863_p5 = scmp.ne.s32.totalorder %s46_s29, %s1862_s17  ;;  %p1868_p7 = scmp.lt.s32.totalorder %s1862_s17, %s1862_s17 }
  0x2d   :  { %p1869_p8 = por %p1868_p7, %p1867_p6 }
  0x2f   :  { %p1870_p9 = pnand %p1869_p8, %p1863_p5 }
  0x31   :  { %1873 = shalt.err (!%p1870_p9)
}
  0x32   :  { %51 = dma.hbm_to_vmem [thread:$0]  %s2078_s3, 6144, %s46_s29, [#allocation5], %s1879_s11, %s1879_s11, %s1880_s12  }
  0x33   :  { %1874 = dma.done.wait [#allocation3], 6144  }
  0x34   :  { %1875 = vsyncadd [#allocation3], 4294961152 }
  0x35   :  { %1876 = dma.done.wait [#allocation5], 8192  }
  0x36   :  { %1877 = vsyncadd [#allocation5], 4294959104  ;;  %v1668_v0 = vld [vmem:[#allocation2 + $0x4] ss:$8 sps:$4 sm:$0xff]   ;;  %v1670_v1 = vld [vmem:[#allocation2] ss:$8 sps:$4 sm:$0xff]  }
  0x37   :  { %388 = vmatprep.subr.bf16.mxu0 %v1668_v0  ;;  %v1671_v2 = vld [vmem:[#allocation2 + $0x14] ss:$8 sps:$4 sm:$0xff]   ;;  %v1673_v3 = vld [vmem:[#allocation2 + $0x10] ss:$8 sps:$4 sm:$0xff]   ;;  %v1674_v4 = vld [vmem:[#allocation2 + $0x24] ss:$8 sps:$4 sm:$0xff]  }
  0x38   :  { %389 = vmatpush1.bf16.msra.mxu0 %v1670_v1  ;;  %v1676_v5 = vld [vmem:[#allocation2 + $0x20] ss:$8 sps:$4 sm:$0xff]   ;;  %v1677_v6 = vld [vmem:[#allocation2 + $0x34] ss:$8 sps:$4 sm:$0xff]   ;;  %v1679_v7 = vld [vmem:[#allocation2 + $0x30] ss:$8 sps:$4 sm:$0xff]  }
  0x39   :  { %390 = vmatprep.subr.bf16.mxu0 %v1671_v2  ;;  %v1680_v8 = vld [vmem:[#allocation2 + $0x44] ss:$8 sps:$4 sm:$0xff]   ;;  %v1682_v9 = vld [vmem:[#allocation2 + $0x40] ss:$8 sps:$4 sm:$0xff]   ;;  %v1683_v10 = vld [vmem:[#allocation2 + $0x54] ss:$8 sps:$4 sm:$0xff]  }
  0x3a   :  { %v1685_v11 = vld [vmem:[#allocation2 + $0x50] ss:$8 sps:$4 sm:$0xff]   ;;  %v1686_v12 = vld [vmem:[#allocation2 + $0x64] ss:$8 sps:$4 sm:$0xff]   ;;  %v1688_v14 = vld [vmem:[#allocation2 + $0x60] ss:$8 sps:$4 sm:$0xff]  }
  0x3b   :  { %v1718_v13 = vld [vmem:[%s2075_s0 + $0x4] ss:$12 sps:$4 sm:$0xff]   ;;  %v1689_v15 = vld [vmem:[#allocation2 + $0x74] ss:$8 sps:$4 sm:$0xff]   ;;  %v1694_v18 = vld [vmem:[#allocation2 + $0x80] ss:$8 sps:$4 sm:$0xff]  }
  0x3c   :  { %391 = vmatpush1.bf16.msra.mxu0 %v1673_v3  ;;  %420 = vmatprep.mubr.bf16.mxu0 %v1718_v13  ;;  %v1691_v16 = vld [vmem:[#allocation2 + $0x70] ss:$8 sps:$4 sm:$0xff]   ;;  %v1692_v17 = vld [vmem:[#allocation2 + $0x84] ss:$8 sps:$4 sm:$0xff]   ;;  %v1695_v19 = vld [vmem:[#allocation2 + $0x94] ss:$8 sps:$4 sm:$0xff]  }
  0x3d   :  { %392 = vmatprep.subr.bf16.mxu0 %v1674_v4  ;;  %v1697_v20 = vld [vmem:[#allocation2 + $0x90] ss:$8 sps:$4 sm:$0xff]   ;;  %v1698_v21 = vld [vmem:[#allocation2 + $0xa4] ss:$8 sps:$4 sm:$0xff]   ;;  %v1700_v24 = vld [vmem:[#allocation2 + $0xa0] ss:$8 sps:$4 sm:$0xff]  }
  0x3e   :  { %v1744_v22 = vld [vmem:[#allocation4 + $0x40] sm:$0xff]   ;;  %v1746_v25 = vld [vmem:[#allocation4 + $0x48] sm:$0xff]   ;;  %v1748_v27 = vld [vmem:[#allocation4 + $0x50] sm:$0xff]   ;;  %v1885_v50 = vmov 0   ;;  %v1886_v4 = vmov 0.0   ;;  %vm1887_vm0 = vmmov 0  }
  0x3f   :  { %v1745_v23 = vld [vmem:[#allocation4] sm:$0xff]   ;;  %1454 = vmatprep.subr.bf16.mxu1 %v1744_v22  ;;  %v1747_v26 = vld [vmem:[#allocation4 + $0x8] sm:$0xff]   ;;  %v1701_v28 = vld [vmem:[#allocation2 + $0xb4] ss:$8 sps:$4 sm:$0xff]  }
  0x40   :  { %393 = vmatpush1.bf16.msra.mxu0 %v1676_v5  ;;  %1455 = vmatpush3.bf16.msra.mxu1 %v1745_v23  ;;  %v1703_v29 = vld [vmem:[#allocation2 + $0xb0] ss:$8 sps:$4 sm:$0xff]   ;;  %v1704_v32 = vld [vmem:[#allocation2 + $0xc4] ss:$8 sps:$4 sm:$0xff]   ;;  %v1706_v33 = vld [vmem:[#allocation2 + $0xc0] ss:$8 sps:$4 sm:$0xff]   ;;  %v122_v5 = vlaneseq }
  0x41   :  { %394 = vmatprep.subr.bf16.mxu0 %v1677_v6  ;;  %1456 = vmatprep.subr.bf16.mxu1 %v1746_v25  ;;  %v1749_v30 = vld [vmem:[#allocation4 + $0x10] sm:$0xff]   ;;  %v1750_v31 = vld [vmem:[#allocation4 + $0x58] sm:$0xff]   ;;  %v1752_v35 = vld [vmem:[#allocation4 + $0x60] sm:$0xff]  }
  0x42   :  { %v1751_v34 = vld [vmem:[#allocation4 + $0x18] sm:$0xff]   ;;  %v1753_v37 = vld [vmem:[#allocation4 + $0x20] sm:$0xff]   ;;  %v1754_v39 = vld [vmem:[#allocation4 + $0x68] sm:$0xff]   ;;  %v123_v6 = vshrl.u32 %v122_v5, 7 }
  0x43   :  { %v1707_v36 = vld [vmem:[#allocation2 + $0xd4] ss:$8 sps:$4 sm:$0xff]   ;;  %v1709_v38 = vld [vmem:[#allocation2 + $0xd0] ss:$8 sps:$4 sm:$0xff]   ;;  %v1710_v40 = vld [vmem:[#allocation2 + $0xe4] ss:$8 sps:$4 sm:$0xff]  }
  0x44   :  { %395 = vmatpush1.bf16.msra.mxu0 %v1679_v7  ;;  %1457 = vmatpush3.bf16.msra.mxu1 %v1747_v26  ;;  %v1712_v41 = vld [vmem:[#allocation2 + $0xe0] ss:$8 sps:$4 sm:$0xff]   ;;  %v1713_v42 = vld [vmem:[#allocation2 + $0xf4] ss:$8 sps:$4 sm:$0xff]   ;;  %v1715_v43 = vld [vmem:[#allocation2 + $0xf0] ss:$8 sps:$4 sm:$0xff]  }
  0x45   :  { %396 = vmatprep.subr.bf16.mxu0 %v1680_v8  ;;  %1458 = vmatprep.subr.bf16.mxu1 %v1748_v27  ;;  %v1721_v44 = vld [vmem:[#allocation2 + $0x104] ss:$8 sps:$4 sm:$0xff]   ;;  %v1719_v46 = vld [vmem:[#allocation2 + $0x100] ss:$8 sps:$4 sm:$0xff]   ;;  %v1724_v47 = vld [vmem:[#allocation2 + $0x114] ss:$8 sps:$4 sm:$0xff]  }
  0x46   :  { %v1716_v45 = vld [vmem:[%s2075_s0] ss:$12 sps:$4 sm:$0xff]   ;;  %v1722_v48 = vld [vmem:[#allocation2 + $0x110] ss:$8 sps:$4 sm:$0xff]   ;;  %v1730_v52 = vld [vmem:[#allocation2 + $0x134] ss:$8 sps:$4 sm:$0xff]  }
  0x47   :  { %v1727_v49 = vld [vmem:[#allocation2 + $0x124] ss:$8 sps:$4 sm:$0xff]   ;;  %v1725_v51 = vld [vmem:[#allocation2 + $0x120] ss:$8 sps:$4 sm:$0xff]   ;;  %v1728_v53 = vld [vmem:[#allocation2 + $0x130] ss:$8 sps:$4 sm:$0xff]  }
  0x48   :  { %397 = vmatpush1.bf16.msra.mxu0 %v1682_v9  ;;  %1459 = vmatpush3.bf16.msra.mxu1 %v1749_v30  ;;  %v1733_v54 = vld [vmem:[#allocation2 + $0x144] ss:$8 sps:$4 sm:$0xff]   ;;  %v1731_v55 = vld [vmem:[#allocation2 + $0x140] ss:$8 sps:$4 sm:$0xff]   ;;  %v1736_v56 = vld [vmem:[#allocation2 + $0x154] ss:$8 sps:$4 sm:$0xff]  }
  0x49   :  { %398 = vmatprep.subr.bf16.mxu0 %v1683_v10  ;;  %1460 = vmatprep.subr.bf16.mxu1 %v1750_v31  ;;  %v1734_v57 = vld [vmem:[#allocation2 + $0x150] ss:$8 sps:$4 sm:$0xff]   ;;  %v1739_v58 = vld [vmem:[#allocation2 + $0x164] ss:$8 sps:$4 sm:$0xff]   ;;  %v1737_v59 = vld [vmem:[#allocation2 + $0x160] ss:$8 sps:$4 sm:$0xff]  }
  0x4a   :  { %v1742_v60 = vld [vmem:[#allocation2 + $0x174] ss:$8 sps:$4 sm:$0xff]   ;;  %v1740_v61 = vld [vmem:[#allocation2 + $0x170] ss:$8 sps:$4 sm:$0xff]   ;;  %v1755_v63 = vld [vmem:[#allocation4 + $0x28] sm:$0xff]   ;;  %v124_v7 = vsub.s32 0, %v123_v6 }
  0x4b   :  { %v1743_v62 = vld [vmem:[%s2075_s0 + $0x8] ss:$12 sps:$4 sm:$0xff]   ;;  %v1758_v2 = vld [vmem:[#allocation4 + $0x78] sm:$0xff]   ;;  %v128_v9 = vsub.s32 1, %v123_v6  ;;  %v1760_v26 = vld [vmem:[#allocation6] sm:$0xff]  }
  0x4c   :  { %399 = vmatpush1.bf16.msra.mxu0 %v1685_v11  ;;  %1461 = vmatpush3.bf16.msra.mxu1 %v1751_v34  ;;  %v1756_v0 = vld [vmem:[#allocation4 + $0x70] sm:$0xff]   ;;  %v1759_v3 = vld [vmem:[#allocation4 + $0x38] sm:$0xff]   ;;  %v120_v8 = vld [vmem:[%s2079_s4] ss:$8 sm:$0x3] }
  0x4d   :  { %400 = vmatprep.subr.bf16.mxu0 %v1686_v12  ;;  %1462 = vmatprep.subr.bf16.mxu1 %v1752_v35  ;;  %v1757_v1 = vld [vmem:[#allocation4 + $0x30] sm:$0xff]   ;;  %v125_v10 = vrot.slane %v120_v8, %v124_v7  ;;  %v129_v11 = vrot.slane %v120_v8, %v128_v9  ;;  %v1761_v27 = vld [vmem:[#allocation6 + $0x8] sm:$0xff]   ;;  %v1764_v30 = vld [vmem:[#allocation6 + $0x20] sm:$0xff]  }
  0x4e   :  { %v1765_v31 = vld [vmem:[#allocation6 + $0x28] sm:$0xff]   ;;  %v512_v35 = vld [vmem:[%s2079_s4 + $0x1] ss:$0 sm:$0xff]  ;;  %v1782_v7 = vld [vmem:[#allocation6 + $0xb0] sm:$0xff]  }
  0x4f   :  { %v1783_v8 = vld [vmem:[#allocation6 + $0xb8] sm:$0xff]   ;;  %v1784_v9 = vld [vmem:[#allocation6 + $0xc0] sm:$0xff]  }
  0x50   :  { %401 = vmatpush1.bf16.msra.mxu0 %v1688_v14  ;;  %1463 = vmatpush3.bf16.msra.mxu1 %v1753_v37 }
  0x51   :  { %402 = vmatprep.subr.bf16.mxu0 %v1689_v15  ;;  %1464 = vmatprep.subr.bf16.mxu1 %v1754_v39 }
  0x54   :  { %403 = vmatpush1.bf16.msra.mxu0 %v1691_v16  ;;  %1465 = vmatpush3.bf16.msra.mxu1 %v1755_v63 }
  0x55   :  { %404 = vmatprep.subr.bf16.mxu0 %v1692_v17  ;;  %1466 = vmatprep.subr.bf16.mxu1 %v1756_v0 }
  0x58   :  { %405 = vmatpush1.bf16.msra.mxu0 %v1694_v18  ;;  %1467 = vmatpush3.bf16.msra.mxu1 %v1757_v1 }
  0x59   :  { %406 = vmatprep.subr.bf16.mxu0 %v1695_v19  ;;  %1468 = vmatprep.subr.bf16.mxu1 %v1758_v2 }
  0x5c   :  { %407 = vmatpush1.bf16.msra.mxu0 %v1697_v20  ;;  %1469 = vmatpush3.bf16.msra.mxu1 %v1759_v3 }
  0x5d   :  { %408 = vmatprep.subr.bf16.mxu0 %v1698_v21  ;;  %1530 = vmatprep.subr.bf16.mxu1 %v1886_v4 }
  0x60   :  { %409 = vmatpush1.bf16.msra.mxu0 %v1700_v24 }
  0x61   :  { %410 = vmatprep.subr.bf16.mxu0 %v1701_v28  ;;  %v1762_v28 = vld [vmem:[#allocation6 + $0x10] sm:$0xff]  }
  0x64   :  { %411 = vmatpush1.bf16.msra.mxu0 %v1703_v29  ;;  %v1763_v29 = vld [vmem:[#allocation6 + $0x18] sm:$0xff]  }
  0x65   :  { %412 = vmatprep.subr.bf16.mxu0 %v1704_v32  ;;  %v1766_v32 = vld [vmem:[#allocation6 + $0x30] sm:$0xff]  }
  0x68   :  { %413 = vmatpush1.bf16.msra.mxu0 %v1706_v33  ;;  %v1767_v33 = vld [vmem:[#allocation6 + $0x38] sm:$0xff]  }
  0x69   :  { %414 = vmatprep.subr.bf16.mxu0 %v1707_v36 }
  0x6c   :  { %415 = vmatpush1.bf16.msra.mxu0 %v1709_v38 }
  0x6d   :  { %416 = vmatprep.subr.bf16.mxu0 %v1710_v40 }
  0x70   :  { %417 = vmatpush1.bf16.msra.mxu0 %v1712_v41 }
  0x71   :  { %418 = vmatprep.subr.bf16.mxu0 %v1713_v42 }
  0x74   :  { %419 = vmatpush1.bf16.msra.mxu0 %v1715_v43 }
  0x75   :  { %431 = vmatprep.subr.bf16.mxu0 %v1721_v44 }
  0x77   :  { %421 = vmatmul.mubr.bf16.vlgmr.msra.gmra.mrb[0].mxu0 %v1716_v45  ;;  %v1768_v45 = vld [vmem:[#allocation6 + $0x40] sm:$0xff]  }
  0x78   :  { %432 = vmatpush1.bf16.msra.mxu0 %v1719_v46  ;;  %463 = vmatprep.mubr.bf16.mxu0 %v1885_v50  ;;  %v1772_v50 = vld [vmem:[#allocation6 + $0x60] sm:$0xff]  }
  0x79   :  { %433 = vmatprep.subr.bf16.mxu0 %v1724_v47  ;;  %v1769_v47 = vld [vmem:[#allocation6 + $0x48] sm:$0xff]  }
  0x7c   :  { %434 = vmatpush1.bf16.msra.mxu0 %v1722_v48  ;;  %v1770_v48 = vld [vmem:[#allocation6 + $0x50] sm:$0xff]  }
  0x7d   :  { %435 = vmatprep.subr.bf16.mxu0 %v1727_v49  ;;  %v1771_v49 = vld [vmem:[#allocation6 + $0x58] sm:$0xff]  }
  0x80   :  { %436 = vmatpush1.bf16.msra.mxu0 %v1725_v51  ;;  %v1773_v51 = vld [vmem:[#allocation6 + $0x68] sm:$0xff]  }
  0x81   :  { %437 = vmatprep.subr.bf16.mxu0 %v1730_v52  ;;  %v1774_v52 = vld [vmem:[#allocation6 + $0x70] sm:$0xff]  }
  0x84   :  { %438 = vmatpush1.bf16.msra.mxu0 %v1728_v53  ;;  %v1775_v53 = vld [vmem:[#allocation6 + $0x78] sm:$0xff]  }
  0x85   :  { %439 = vmatprep.subr.bf16.mxu0 %v1733_v54  ;;  %v1776_v54 = vld [vmem:[#allocation6 + $0x80] sm:$0xff]  }
  0x88   :  { %440 = vmatpush1.bf16.msra.mxu0 %v1731_v55  ;;  %v1777_v55 = vld [vmem:[#allocation6 + $0x88] sm:$0xff]  }
  0x89   :  { %441 = vmatprep.subr.bf16.mxu0 %v1736_v56  ;;  %v1778_v56 = vld [vmem:[#allocation6 + $0x90] sm:$0xff]  }
  0x8c   :  { %442 = vmatpush1.bf16.msra.mxu0 %v1734_v57  ;;  %v1779_v57 = vld [vmem:[#allocation6 + $0x98] sm:$0xff]  }
  0x8d   :  { %443 = vmatprep.subr.bf16.mxu0 %v1739_v58  ;;  %v1780_v58 = vld [vmem:[#allocation6 + $0xa0] sm:$0xff]  }
  0x90   :  { %444 = vmatpush1.bf16.msra.mxu0 %v1737_v59  ;;  %v1781_v59 = vld [vmem:[#allocation6 + $0xa8] sm:$0xff]  }
  0x91   :  { %445 = vmatprep.subr.bf16.mxu0 %v1742_v60  ;;  %v669_v60 = vld [vmem:[%s2079_s4 + $0x2] ss:$0 sm:$0xff] }
  0x94   :  { %446 = vmatpush1.bf16.msra.mxu0 %v1740_v61 }
  0x95   :  { %1570 = vmatprep.subr.bf16.mxu0 %v1886_v4 }
  0x97   :  { %464 = vmatmul.mubr.bf16.vlgmr.msra.gmra.mrb[0].mxu0 %v1743_v62 }
  0x98   :  { %1586 = vmatprep.mubr.msk.bf16.mxu0 %vm1887_vm0, %v1886_v4  ;;  %1571 = vmatpush3.bf16.msra.mxu0 %v1776_v54 }
  0x99   :  { %1572 = vmatprep.subr.bf16.mxu0 %v1886_v4 }
  0x9c   :  { %1573 = vmatpush3.bf16.msra.mxu0 %v1777_v55 }
  0x9d   :  { %1574 = vmatprep.subr.bf16.mxu0 %v1886_v4 }
  0xa0   :  { %1575 = vmatpush3.bf16.msra.mxu0 %v1778_v56 }
  0xa1   :  { %1576 = vmatprep.subr.bf16.mxu0 %v1886_v4 }
  0xa4   :  { %1577 = vmatpush3.bf16.msra.mxu0 %v1779_v57 }
  0xa5   :  { %1578 = vmatprep.subr.bf16.mxu0 %v1886_v4 }
  0xa8   :  { %1579 = vmatpush3.bf16.msra.mxu0 %v1780_v58 }
  0xa9   :  { %1580 = vmatprep.subr.bf16.mxu0 %v1886_v4 }
  0xac   :  { %1581 = vmatpush3.bf16.msra.mxu0 %v1781_v59 }
  0xad   :  { %1582 = vmatprep.subr.bf16.mxu0 %v1886_v4 }
  0xb0   :  { %1583 = vmatpush3.bf16.msra.mxu0 %v1782_v7 }
  0xb1   :  { %1584 = vmatprep.subr.bf16.mxu0 %v1886_v4 }
  0xb4   :  { %1585 = vmatpush3.bf16.msra.mxu0 %v1783_v8 }
  0xb5   :  { %1610 = vmatprep.subr.bf16.mxu0 %v1886_v4 }
 0x16a   :  { %v465_v12 = vpop.f32.mrb[0].mxu0 }
 0x16b   :  { %v1650_v13 = vadd.f32 %v465_v12, %v125_v10  ;;  %v467_v14 = vpop.f32.mrb[1].mxu0  ;;  %v1787_v12 = vld [vmem:[#allocation6 + $0xd8] sm:$0xff]  }
 0x16c   :  { %v1651_v15 = vadd.f32 %v467_v14, %v129_v11  ;;  %v469_v16 = vpop.f32.mrb[2].mxu0  ;;  %v1789_v14 = vld [vmem:[#allocation6 + $0xe8] sm:$0xff]  }
 0x16d   :  { %v1652_v17 = vadd.f32 %v469_v16, %v125_v10  ;;  %v471_v18 = vpop.f32.mrb[3].mxu0  ;;  %v474_v20 = vmax.f32 %v1650_v13, 0.0  ;;  %v1785_v10 = vld [vmem:[#allocation6 + $0xc8] sm:$0xff]   ;;  %v1788_v13 = vld [vmem:[#allocation6 + $0xe0] sm:$0xff]  }
 0x16e   :  { %v1653_v19 = vadd.f32 %v471_v18, %v129_v11  ;;  %v475_v22 = vmax.f32 %v1651_v15, 0.0  ;;  %v1786_v11 = vld [vmem:[#allocation6 + $0xd0] sm:$0xff]   ;;  %v779_v15 = vld [vmem:[%s2079_s4 + $0x3] ss:$0 sm:$0xff] }
 0x16f   :  { %v476_v21 = vmax.f32 %v1652_v17, 0.0 }
 0x170   :  { %v477_v23 = vmax.f32 %v1653_v19, 0.0 }
 0x171   :  { %v478_v24 = vpack.c.bf16 %v476_v21, %v474_v20 }
 0x172   :  { %v479_v25 = vpack.c.bf16 %v477_v23, %v475_v22 }
 0x174   :  { %641 = vmatprep.mubr.bf16.mxu1 %v479_v25  ;;  %v1790_v25 = vld [vmem:[#allocation6 + $0xf0] sm:$0xff]  }
 0x175   :  { %642 = vmatmul.mubr.bf16.vlgmr.msra.gmra.mrb[0].mxu1 %v478_v24 }
 0x176   :  { %1531 = vmatpush3.bf16.msra.mxu1 %v1760_v26  ;;  %1546 = vmatprep.mubr.msk.bf16.mxu1 %vm1887_vm0, %v1886_v4  ;;  %v1791_v26 = vld [vmem:[#allocation6 + $0xf8] sm:$0xff]  }
 0x177   :  { %1532 = vmatprep.subr.bf16.mxu1 %v1886_v4 }
 0x17a   :  { %1533 = vmatpush3.bf16.msra.mxu1 %v1761_v27  ;;  %v1792_v27 = vld [vmem:[#allocation6 + $0x100] sm:$0xff]  }
 0x17b   :  { %1534 = vmatprep.subr.bf16.mxu1 %v1886_v4 }
 0x17e   :  { %1535 = vmatpush3.bf16.msra.mxu1 %v1762_v28  ;;  %v1793_v28 = vld [vmem:[#allocation6 + $0x108] sm:$0xff]  }
 0x17f   :  { %1536 = vmatprep.subr.bf16.mxu1 %v1886_v4 }
 0x182   :  { %1537 = vmatpush3.bf16.msra.mxu1 %v1763_v29  ;;  %v1794_v29 = vld [vmem:[#allocation6 + $0x110] sm:$0xff]  }
 0x183   :  { %1538 = vmatprep.subr.bf16.mxu1 %v1886_v4 }
 0x186   :  { %1539 = vmatpush3.bf16.msra.mxu1 %v1764_v30  ;;  %v1795_v30 = vld [vmem:[#allocation6 + $0x118] sm:$0xff]  }
 0x187   :  { %1540 = vmatprep.subr.bf16.mxu1 %v1886_v4 }
 0x18a   :  { %1541 = vmatpush3.bf16.msra.mxu1 %v1765_v31  ;;  %v1796_v31 = vld [vmem:[#allocation6 + $0x120] sm:$0xff]  }
 0x18b   :  { %1542 = vmatprep.subr.bf16.mxu1 %v1886_v4 }
 0x18e   :  { %1543 = vmatpush3.bf16.msra.mxu1 %v1766_v32  ;;  %v1797_v32 = vld [vmem:[#allocation6 + $0x128] sm:$0xff]  }
 0x18f   :  { %1544 = vmatprep.subr.bf16.mxu1 %v1886_v4 }
 0x192   :  { %1545 = vmatpush3.bf16.msra.mxu1 %v1767_v33  ;;  %v889_v33 = vld [vmem:[%s2079_s4 + $0x4] ss:$0 sm:$0xff] }
 0x193   :  { %1550 = vmatprep.subr.bf16.mxu1 %v1886_v4 }
 0x248   :  { %v1470_v34 = vpop.f32.mrb[0].mxu1 }
 0x249   :  { %v1471_v36 = vpop.f32.mrb[1].mxu1 }
 0x24a   :  { %v1472_v37 = vadd.f32 %v1471_v36, %v1470_v34  ;;  %v1473_v38 = vpop.f32.mrb[2].mxu1 }
 0x24b   :  { %v1474_v39 = vpop.f32.mrb[3].mxu1 }
 0x24c   :  { %v644_v40 = vadd.f32 %v1472_v37, %v512_v35  ;;  %v1475_v41 = vadd.f32 %v1474_v39, %v1473_v38 }
 0x24e   :  { %v647_v42 = vadd.f32 %v1475_v41, %v512_v35  ;;  %v650_v43 = vmax.f32 %v644_v40, 0.0 }
 0x250   :  { %v651_v44 = vmax.f32 %v647_v42, 0.0 }
 0x252   :  { %v652_v46 = vpack.c.bf16 %v651_v44, %v650_v43  ;;  %v1798_v43 = vld [vmem:[#allocation6 + $0x130] sm:$0xff]   ;;  %v1799_v44 = vld [vmem:[#allocation6 + $0x138] sm:$0xff]  }
 0x254   :  { %1547 = vmatmul.mubr.bf16.vlgmr.msra.gmra.mrb[4].mxu1 %v652_v46  ;;  %v1801_v46 = vld [vmem:[#allocation6 + $0x148] sm:$0xff]  }
 0x255   :  { %1551 = vmatpush3.bf16.msra.mxu1 %v1768_v45  ;;  %1566 = vmatprep.mubr.msk.bf16.mxu1 %vm1887_vm0, %v1886_v4  ;;  %v1800_v45 = vld [vmem:[#allocation6 + $0x140] sm:$0xff]  }
 0x256   :  { %1552 = vmatprep.subr.bf16.mxu1 %v1886_v4 }
 0x259   :  { %1553 = vmatpush3.bf16.msra.mxu1 %v1769_v47  ;;  %v1802_v47 = vld [vmem:[#allocation6 + $0x150] sm:$0xff]  }
 0x25a   :  { %1554 = vmatprep.subr.bf16.mxu1 %v1886_v4 }
 0x25d   :  { %1555 = vmatpush3.bf16.msra.mxu1 %v1770_v48  ;;  %v1803_v48 = vld [vmem:[#allocation6 + $0x158] sm:$0xff]  }
 0x25e   :  { %1556 = vmatprep.subr.bf16.mxu1 %v1886_v4 }
 0x261   :  { %1557 = vmatpush3.bf16.msra.mxu1 %v1771_v49  ;;  %v1804_v49 = vld [vmem:[#allocation6 + $0x160] sm:$0xff]  }
 0x262   :  { %1558 = vmatprep.subr.bf16.mxu1 %v1886_v4 }
 0x265   :  { %1559 = vmatpush3.bf16.msra.mxu1 %v1772_v50  ;;  %v1805_v50 = vld [vmem:[#allocation6 + $0x168] sm:$0xff]  }
 0x266   :  { %1560 = vmatprep.subr.bf16.mxu1 %v1886_v4 }
 0x269   :  { %1561 = vmatpush3.bf16.msra.mxu1 %v1773_v51  ;;  %v999_v51 = vld [vmem:[%s2079_s4 + $0x5] ss:$0 sm:$0xff] }
 0x26a   :  { %1562 = vmatprep.subr.bf16.mxu1 %v1886_v4 }
 0x26d   :  { %1563 = vmatpush3.bf16.msra.mxu1 %v1774_v52 }
 0x26e   :  { %1564 = vmatprep.subr.bf16.mxu1 %v1886_v4 }
 0x271   :  { %1565 = vmatpush3.bf16.msra.mxu1 %v1775_v53 }
 0x272   :  { %1590 = vmatprep.subr.bf16.mxu1 %v1886_v4 }
 0x327   :  { %v752_v61 = vpop.f32.mrb[4].mxu1 }
 0x328   :  { %v753_v62 = vadd.f32 %v752_v61, %v669_v60  ;;  %v1548_v63 = vpop.f32.mrb[5].mxu1  ;;  %v1806_v61 = vld [vmem:[#allocation6 + $0x170] sm:$0xff]  }
 0x329   :  { %v755_v0 = vpop.f32.mrb[6].mxu1  ;;  %v1109_v63 = vld [vmem:[%s2079_s4 + $0x6] ss:$0 sm:$0xff] }
 0x32a   :  { %v756_v1 = vadd.f32 %v755_v0, %v669_v60  ;;  %v1549_v2 = vpop.f32.mrb[7].mxu1  ;;  %v759_v3 = vmax.f32 %v753_v62, 0.0  ;;  %v1807_v62 = vld [vmem:[#allocation6 + $0x178] sm:$0xff]  }
 0x32c   :  { %v760_v5 = vmax.f32 %v756_v1, 0.0 }
 0x32e   :  { %v761_v6 = vpack.c.bf16 %v760_v5, %v759_v3 }
 0x330   :  { %1567 = vmatmul.mubr.bf16.vlgmr.msra.gmra.mrb[8].mxu1 %v761_v6 }
 0x331   :  { %1606 = vmatprep.mubr.msk.bf16.mxu1 %vm1887_vm0, %v1886_v4  ;;  %1591 = vmatpush3.bf16.msra.mxu1 %v1784_v9 }
 0x332   :  { %1592 = vmatprep.subr.bf16.mxu1 %v1886_v4 }
 0x335   :  { %1593 = vmatpush3.bf16.msra.mxu1 %v1785_v10 }
 0x336   :  { %1594 = vmatprep.subr.bf16.mxu1 %v1886_v4 }
 0x339   :  { %1595 = vmatpush3.bf16.msra.mxu1 %v1786_v11 }
 0x33a   :  { %1596 = vmatprep.subr.bf16.mxu1 %v1886_v4 }
 0x33d   :  { %1597 = vmatpush3.bf16.msra.mxu1 %v1787_v12 }
 0x33e   :  { %1598 = vmatprep.subr.bf16.mxu1 %v1886_v4 }
 0x341   :  { %1599 = vmatpush3.bf16.msra.mxu1 %v1788_v13  ;;  %v1452_v13 = vld [vmem:[%s2080_s5] ss:$0 sm:$0xff] }
 0x342   :  { %1600 = vmatprep.subr.bf16.mxu1 %v1886_v4 }
 0x345   :  { %1601 = vmatpush3.bf16.msra.mxu1 %v1789_v14 }
 0x346   :  { %1602 = vmatprep.subr.bf16.mxu1 %v1886_v4 }
 0x349   :  { %1603 = vmatpush3.bf16.msra.mxu1 %v1790_v25 }
 0x34a   :  { %1604 = vmatprep.subr.bf16.mxu1 %v1886_v4 }
 0x34d   :  { %1605 = vmatpush3.bf16.msra.mxu1 %v1791_v26 }
 0x34e   :  { %1630 = vmatprep.subr.bf16.mxu1 %v1886_v4 }
 0x403   :  { %v862_v16 = vpop.f32.mrb[8].mxu1 }
 0x404   :  { %v863_v17 = vadd.f32 %v862_v16, %v779_v15  ;;  %v1568_v18 = vpop.f32.mrb[9].mxu1 }
 0x405   :  { %v865_v19 = vpop.f32.mrb[10].mxu1  ;;  %v1453_v18 = vld [vmem:[%s2081_s6] ss:$0 sm:$0xff] }
 0x406   :  { %v866_v20 = vadd.f32 %v865_v19, %v779_v15  ;;  %v1569_v21 = vpop.f32.mrb[11].mxu1  ;;  %v869_v22 = vmax.f32 %v863_v17, 0.0 }
 0x408   :  { %v870_v23 = vmax.f32 %v866_v20, 0.0 }
 0x40a   :  { %v871_v24 = vpack.c.bf16 %v870_v23, %v869_v22 }
 0x40c   :  { %1587 = vmatmul.mubr.bf16.vlgmr.msra.gmra.mrb[4].mxu0 %v871_v24 }
 0x40d   :  { %1626 = vmatprep.mubr.msk.bf16.mxu0 %vm1887_vm0, %v1886_v4  ;;  %1611 = vmatpush3.bf16.msra.mxu0 %v1792_v27 }
 0x40e   :  { %1612 = vmatprep.subr.bf16.mxu0 %v1886_v4 }
 0x411   :  { %1613 = vmatpush3.bf16.msra.mxu0 %v1793_v28 }
 0x412   :  { %1614 = vmatprep.subr.bf16.mxu0 %v1886_v4 }
 0x415   :  { %1615 = vmatpush3.bf16.msra.mxu0 %v1794_v29 }
 0x416   :  { %1616 = vmatprep.subr.bf16.mxu0 %v1886_v4 }
 0x419   :  { %1617 = vmatpush3.bf16.msra.mxu0 %v1795_v30 }
 0x41a   :  { %1618 = vmatprep.subr.bf16.mxu0 %v1886_v4 }
 0x41d   :  { %1619 = vmatpush3.bf16.msra.mxu0 %v1796_v31 }
 0x41e   :  { %1620 = vmatprep.subr.bf16.mxu0 %v1886_v4 }
 0x421   :  { %1621 = vmatpush3.bf16.msra.mxu0 %v1797_v32 }
 0x422   :  { %1622 = vmatprep.subr.bf16.mxu0 %v1886_v4 }
 0x425   :  { %1623 = vmatpush3.bf16.msra.mxu0 %v1798_v43 }
 0x426   :  { %1624 = vmatprep.subr.bf16.mxu0 %v1886_v4 }
 0x429   :  { %1625 = vmatpush3.bf16.msra.mxu0 %v1799_v44 }
 0x4df   :  { %v972_v34 = vpop.f32.mrb[4].mxu0 }
 0x4e0   :  { %v973_v35 = vadd.f32 %v972_v34, %v889_v33  ;;  %v1588_v36 = vpop.f32.mrb[5].mxu0 }
 0x4e1   :  { %v975_v37 = vpop.f32.mrb[6].mxu0 }
 0x4e2   :  { %v976_v38 = vadd.f32 %v975_v37, %v889_v33  ;;  %v1589_v39 = vpop.f32.mrb[7].mxu0  ;;  %v979_v40 = vmax.f32 %v973_v35, 0.0 }
 0x4e4   :  { %v980_v41 = vmax.f32 %v976_v38, 0.0 }
 0x4e6   :  { %v981_v42 = vpack.c.bf16 %v980_v41, %v979_v40 }
 0x4e8   :  { %1607 = vmatmul.mubr.bf16.vlgmr.msra.gmra.mrb[12].mxu1 %v981_v42 }
 0x4e9   :  { %1646 = vmatprep.mubr.msk.bf16.mxu1 %vm1887_vm0, %v1886_v4  ;;  %1631 = vmatpush3.bf16.msra.mxu1 %v1800_v45 }
 0x4ea   :  { %1632 = vmatprep.subr.bf16.mxu1 %v1886_v4 }
 0x4ed   :  { %1633 = vmatpush3.bf16.msra.mxu1 %v1801_v46 }
 0x4ee   :  { %1634 = vmatprep.subr.bf16.mxu1 %v1886_v4 }
 0x4f1   :  { %1635 = vmatpush3.bf16.msra.mxu1 %v1802_v47 }
 0x4f2   :  { %1636 = vmatprep.subr.bf16.mxu1 %v1886_v4 }
 0x4f5   :  { %1637 = vmatpush3.bf16.msra.mxu1 %v1803_v48 }
 0x4f6   :  { %1638 = vmatprep.subr.bf16.mxu1 %v1886_v4 }
 0x4f9   :  { %1639 = vmatpush3.bf16.msra.mxu1 %v1804_v49 }
 0x4fa   :  { %1640 = vmatprep.subr.bf16.mxu1 %v1886_v4 }
 0x4fd   :  { %1641 = vmatpush3.bf16.msra.mxu1 %v1805_v50 }
 0x4fe   :  { %1642 = vmatprep.subr.bf16.mxu1 %v1886_v4 }
 0x501   :  { %1643 = vmatpush3.bf16.msra.mxu1 %v1806_v61 }
 0x502   :  { %1644 = vmatprep.subr.bf16.mxu1 %v1886_v4  ;;  %v1219_v4 = vld [vmem:[%s2079_s4 + $0x7] ss:$0 sm:$0xff] }
 0x505   :  { %1645 = vmatpush3.bf16.msra.mxu1 %v1807_v62 }
 0x5bb   :  { %v1082_v52 = vpop.f32.mrb[12].mxu1 }
 0x5bc   :  { %v1083_v53 = vadd.f32 %v1082_v52, %v999_v51  ;;  %v1608_v54 = vpop.f32.mrb[13].mxu1 }
 0x5bd   :  { %v1085_v55 = vpop.f32.mrb[14].mxu1 }
 0x5be   :  { %v1086_v56 = vadd.f32 %v1085_v55, %v999_v51  ;;  %v1609_v57 = vpop.f32.mrb[15].mxu1  ;;  %v1089_v58 = vmax.f32 %v1083_v53, 0.0 }
 0x5c0   :  { %v1090_v59 = vmax.f32 %v1086_v56, 0.0 }
 0x5c2   :  { %v1091_v60 = vpack.c.bf16 %v1090_v59, %v1089_v58 }
 0x5c4   :  { %1627 = vmatmul.mubr.bf16.vlgmr.msra.gmra.mrb[8].mxu0 %v1091_v60 }
 0x697   :  { %v1192_v0 = vpop.f32.mrb[8].mxu0 }
 0x698   :  { %v1193_v1 = vadd.f32 %v1192_v0, %v1109_v63  ;;  %v1628_v2 = vpop.f32.mrb[9].mxu0 }
 0x699   :  { %v1195_v3 = vpop.f32.mrb[10].mxu0 }
 0x69a   :  { %v1196_v5 = vadd.f32 %v1195_v3, %v1109_v63  ;;  %v1629_v6 = vpop.f32.mrb[11].mxu0  ;;  %v1199_v7 = vmax.f32 %v1193_v1, 0.0 }
 0x69c   :  { %v1200_v8 = vmax.f32 %v1196_v5, 0.0 }
 0x69e   :  { %v1201_v9 = vpack.c.bf16 %v1200_v8, %v1199_v7 }
 0x6a0   :  { %1647 = vmatmul.mubr.bf16.vlgmr.msra.gmra.mrb[16].mxu1 %v1201_v9 }
 0x773   :  { %v1302_v10 = vpop.f32.mrb[16].mxu1 }
 0x774   :  { %v1303_v11 = vadd.f32 %v1302_v10, %v1219_v4  ;;  %v1648_v12 = vpop.f32.mrb[17].mxu1 }
 0x775   :  { %v1305_v14 = vpop.f32.mrb[18].mxu1 }
 0x776   :  { %v1309_v15 = vmax.f32 %v1303_v11, 0.0  ;;  %v1306_v16 = vadd.f32 %v1305_v14, %v1219_v4  ;;  %v1649_v17 = vpop.f32.mrb[19].mxu1 }
 0x778   :  { %v1318_v19 = vmul.f32 %v1452_v13, %v1309_v15  ;;  %v1310_v20 = vmax.f32 %v1306_v16, 0.0 }
 0x77a   :  { %v1327_v21 = vadd.f32 %v1453_v18, %v1318_v19  ;;  %v1319_v22 = vmul.f32 %v1452_v13, %v1310_v20 }
 0x77c   :  { %1329 = vst [vmem:[%s2082_s7] sm:$0xff] %v1327_v21  ;;  %v1328_v23 = vadd.f32 %v1453_v18, %v1319_v22 }
 0x77e   :  { %1330 = vst [vmem:[%s2082_s7 + $0x8] sm:$0xff] %v1328_v23 }
 0x77f   :  { %1335 = vsyncpa [#allocation3], 1 }
 0x780   :  { %1336 = vsyncpa [#allocation5], 1 }

</bundles_post_ra>
